<compile_context>
chip_gen: v5e
topology: v5e:2x2
jax: 0.10.0
libtpu: 0.0.40
codegen_flags: <defaults>
</compile_context>

<pallas_src>
import jax
import jax.numpy as jnp
from jax import lax
from jax.experimental import pallas as pl
from jax.experimental.pallas import tpu as pltpu

_LANE = 128


def _round_up(n, m=_LANE):
    return ((n + m - 1) // m) * m


def _pad_to(x, shape):
    return jnp.pad(x, [(0, t - s) for s, t in zip(x.shape, shape)])


def _generator_kernel(y_ref, z_ref, embed_ref,
                      w1a_ref, w1b_ref, g1_ref, b1_ref,
                      w2_ref, g2_ref, b2_ref,
                      w3_ref, g3_ref, b3_ref,
                      w4_ref, b4_ref,
                      out_ref):
    eps = jnp.float32(1e-5)
    B = y_ref.shape[0]
    n_label = embed_ref.shape[0]

    # Embedding gather expressed as a one-hot matmul on the MXU; together with
    # the split first-layer matmul this removes the JAX-side gather + concat
    # fusion boundary in front of the kernel.
    onehot = (lax.broadcasted_iota(jnp.int32, (B, n_label), 1)
              == y_ref[...]).astype(jnp.float32)
    y_emb = jnp.dot(onehot, embed_ref[...], preferred_element_type=jnp.float32)

    def bn_relu(y, g_ref, b_ref):
        # BatchNorm1d training-mode forward (batch mean, biased batch variance),
        # folded into a single scale/shift sweep over the (B, N) tile.
        mean = jnp.mean(y, axis=0, keepdims=True)
        var = jnp.mean(y * y, axis=0, keepdims=True) - mean * mean
        scale = g_ref[...] * lax.rsqrt(var + eps)     # rsqrt -> EUP slot
        shift = b_ref[...] - mean * scale
        return jnp.maximum(y * scale + shift, 0.0)    # 2 VPU ops on the big tile

    # Layer 1: concat([z, y_emb]) @ w1  ==  z @ w1a + y_emb @ w1b
    h = (jnp.dot(z_ref[...], w1a_ref[...], preferred_element_type=jnp.float32)
         + jnp.dot(y_emb, w1b_ref[...], preferred_element_type=jnp.float32))
    h = bn_relu(h, g1_ref, b1_ref)
    h = bn_relu(jnp.dot(h, w2_ref[...], preferred_element_type=jnp.float32),
                g2_ref, b2_ref)
    h = bn_relu(jnp.dot(h, w3_ref[...], preferred_element_type=jnp.float32),
                g3_ref, b3_ref)

    # Final Linear (with bias) + Tanh, written to a lane-dense (B, 128) slab.
    out = jnp.dot(h, w4_ref[...], preferred_element_type=jnp.float32) + b4_ref[...]
    out_ref[...] = jnp.tanh(out)


def generator_forward(z, y, ker):
    """z: (B, z_dim) float32, y: (B,) integer labels. Returns (B, out_features)."""
    B = z.shape[0]
    out_pad = ker["w4"].shape[-1]

    vmem = pl.BlockSpec(memory_space=pltpu.MemorySpace.VMEM)
    operands = (
        y.reshape(B, 1).astype(jnp.int32),
        z.astype(jnp.float32),
        ker["embed"],
        ker["w1a"], ker["w1b"], ker["g1"], ker["b1"],
        ker["w2"], ker["g2"], ker["b2"],
        ker["w3"], ker["g3"], ker["b3"],
        ker["w4"], ker["b4"],
    )

    out = pl.pallas_call(
        _generator_kernel,
        out_shape=jax.ShapeDtypeStruct((B, out_pad), jnp.float32),
        in_specs=[vmem] * len(operands),
        out_specs=vmem,
    )(*operands)
    # Slice the padded lanes off outside the kernel (free layout plumbing).
    return out[:, :ker["out_features"]]


def init_params(key, z_dim, gendim, embedding, label, out_features=2):
    """Returns (kernel_params_padded, raw_params) with the shapes nn.Module implies."""
    ks = jax.random.split(key, 6)
    in0 = z_dim + embedding
    raw = {
        # nn.Embedding(label, embedding) weight: (label, embedding)
        "embed": jax.random.normal(ks[0], (label, embedding), jnp.float32),
        # Linear weights stored pre-transposed as (in, out).
        "w1": jax.random.normal(ks[1], (in0, gendim[0]), jnp.float32) * 0.1,
        "w2": jax.random.normal(ks[2], (gendim[0], gendim[1]), jnp.float32) * 0.1,
        "w3": jax.random.normal(ks[3], (gendim[1], gendim[2]), jnp.float32) * 0.1,
        "w4": jax.random.normal(ks[4], (gendim[2], out_features), jnp.float32) * 0.1,
        "b4": jax.random.normal(ks[5], (1, out_features), jnp.float32) * 0.1,
        # BatchNorm affine params (PyTorch init: gamma=1, beta=0), 2-D for broadcast.
        "g1": jnp.ones((1, gendim[0]), jnp.float32),
        "b1": jnp.zeros((1, gendim[0]), jnp.float32),
        "g2": jnp.ones((1, gendim[1]), jnp.float32),
        "b2": jnp.zeros((1, gendim[1]), jnp.float32),
        "g3": jnp.ones((1, gendim[2]), jnp.float32),
        "b3": jnp.zeros((1, gendim[2]), jnp.float32),
    }

    # Lane-dense padding of every feature dim to a multiple of 128. Padding is
    # applied consistently (zero weight rows/cols, zero gamma/beta) so padded
    # lanes stay exactly 0 through BN+ReLU and contribute nothing downstream.
    g0p, g1p, g2p = (_round_up(g) for g in gendim)
    op = _round_up(out_features)
    ker = {
        "embed": raw["embed"],
        "w1a": _pad_to(raw["w1"][:z_dim], (z_dim, g0p)),
        "w1b": _pad_to(raw["w1"][z_dim:], (embedding, g0p)),
        "g1": _pad_to(raw["g1"], (1, g0p)),
        "b1": _pad_to(raw["b1"], (1, g0p)),
        "w2": _pad_to(raw["w2"], (g0p, g1p)),
        "g2": _pad_to(raw["g2"], (1, g1p)),
        "b2": _pad_to(raw["b2"], (1, g1p)),
        "w3": _pad_to(raw["w3"], (g1p, g2p)),
        "g3": _pad_to(raw["g3"], (1, g2p)),
        "b3": _pad_to(raw["b3"], (1, g2p)),
        "w4": _pad_to(raw["w4"], (g2p, op)),
        "b4": _pad_to(raw["b4"], (1, op)),
        "out_features": out_features,
    }
    return ker, raw


def _reference_forward(z, y, raw):
    """Pure-JAX reference matching the PyTorch module (training-mode BN)."""
    y_embed = jnp.take(raw["embed"], y, axis=0).astype(z.dtype)
    h = jnp.concatenate([z, y_embed], axis=1)
    eps = 1e-5
    for wk, gk, bk in (("w1", "g1", "b1"), ("w2", "g2", "b2"), ("w3", "g3", "b3")):
        h = h @ raw[wk]
        mean = jnp.mean(h, axis=0, keepdims=True)
        var = jnp.mean((h - mean) ** 2, axis=0, keepdims=True)
        h = (h - mean) / jnp.sqrt(var + eps) * raw[gk] + raw[bk]
        h = jnp.maximum(h, 0.0)
    return jnp.tanh(h @ raw["w4"] + raw["b4"])


if __name__ == "__main__":
    # Small shapes consistent with the module's forward.
    z_dim, embedding, label = 16, 8, 10
    gendim = (32, 64, 32)
    batch = 8

    key = jax.random.PRNGKey(0)
    k_params, k_z, k_y = jax.random.split(key, 3)

    ker, raw = init_params(k_params, z_dim, gendim, embedding, label)
    z = jax.random.normal(k_z, (batch, z_dim), jnp.float32)
    y = jax.random.randint(k_y, (batch,), 0, label, jnp.int32)

    out = generator_forward(z, y, ker)
    out = jax.block_until_ready(out)

    ref = _reference_forward(z, y, raw)
    assert out.shape == (batch, 2), out.shape
    # one-pass variance + rsqrt in-kernel vs two-pass reference -> slightly looser tol
    assert jnp.allclose(out, ref, atol=1e-4, rtol=1e-4), "mismatch vs reference"

    print("KERNEL_OK")
</pallas_src>

<mosaic_0001>
module attributes {stable_mosaic.version = 11 : i64} {
  func.func @_generator_kernel(%arg0: memref<8x1xi32, #tpu.memory_space<vmem>>, %arg1: memref<8x16xf32, #tpu.memory_space<vmem>>, %arg2: memref<10x8xf32, #tpu.memory_space<vmem>>, %arg3: memref<16x128xf32, #tpu.memory_space<vmem>>, %arg4: memref<8x128xf32, #tpu.memory_space<vmem>>, %arg5: memref<1x128xf32, #tpu.memory_space<vmem>>, %arg6: memref<1x128xf32, #tpu.memory_space<vmem>>, %arg7: memref<128x128xf32, #tpu.memory_space<vmem>>, %arg8: memref<1x128xf32, #tpu.memory_space<vmem>>, %arg9: memref<1x128xf32, #tpu.memory_space<vmem>>, %arg10: memref<128x128xf32, #tpu.memory_space<vmem>>, %arg11: memref<1x128xf32, #tpu.memory_space<vmem>>, %arg12: memref<1x128xf32, #tpu.memory_space<vmem>>, %arg13: memref<128x128xf32, #tpu.memory_space<vmem>>, %arg14: memref<1x128xf32, #tpu.memory_space<vmem>>, %arg15: memref<8x128xf32, #tpu.memory_space<vmem>>) attributes {dimension_semantics = [], scalar_prefetch = 0 : i64, scratch_operands = 0 : i64, tpu.core_type = #tpu.core_type<tc>} {
    %0 = tpu.iota {dimensions = array<i32: 1>} : vector<8x10xi32>
    %c0 = arith.constant 0 : index
    %c0_0 = arith.constant 0 : index
    %1 = vector.load %arg0[%c0, %c0_0] : memref<8x1xi32, #tpu.memory_space<vmem>>, vector<8x1xi32>
    %2 = vector.broadcast %1 : vector<8x1xi32> to vector<8x10xi32>
    %3 = arith.cmpi eq, %0, %2 : vector<8x10xi32>
    %4 = arith.extui %3 : vector<8x10xi1> to vector<8x10xi32>
    %5 = arith.sitofp %4 : vector<8x10xi32> to vector<8x10xf32>
    %c0_1 = arith.constant 0 : index
    %c0_2 = arith.constant 0 : index
    %6 = vector.load %arg2[%c0_1, %c0_2] : memref<10x8xf32, #tpu.memory_space<vmem>>, vector<10x8xf32>
    %cst = arith.constant dense<0.000000e+00> : vector<8x8xf32>
    %7 = tpu.matmul %5, %6, %cst {dimension_numbers = #tpu.dot_dimension_numbers<[1], [0], [0], [1], [0, 0, 1, 1], [], []>} : vector<8x10xf32>, vector<10x8xf32>, vector<8x8xf32> -> vector<8x8xf32>
    %c0_3 = arith.constant 0 : index
    %c0_4 = arith.constant 0 : index
    %8 = vector.load %arg1[%c0_3, %c0_4] : memref<8x16xf32, #tpu.memory_space<vmem>>, vector<8x16xf32>
    %c0_5 = arith.constant 0 : index
    %c0_6 = arith.constant 0 : index
    %9 = vector.load %arg3[%c0_5, %c0_6] : memref<16x128xf32, #tpu.memory_space<vmem>>, vector<16x128xf32>
    %cst_7 = arith.constant dense<0.000000e+00> : vector<8x128xf32>
    %10 = tpu.matmul %8, %9, %cst_7 {dimension_numbers = #tpu.dot_dimension_numbers<[1], [0], [0], [1], [0, 0, 1, 1], [], []>} : vector<8x16xf32>, vector<16x128xf32>, vector<8x128xf32> -> vector<8x128xf32>
    %c0_8 = arith.constant 0 : index
    %c0_9 = arith.constant 0 : index
    %11 = vector.load %arg4[%c0_8, %c0_9] : memref<8x128xf32, #tpu.memory_space<vmem>>, vector<8x128xf32>
    %cst_10 = arith.constant dense<0.000000e+00> : vector<8x128xf32>
    %12 = tpu.matmul %7, %11, %cst_10 {dimension_numbers = #tpu.dot_dimension_numbers<[1], [0], [0], [1], [0, 0, 1, 1], [], []>} : vector<8x8xf32>, vector<8x128xf32>, vector<8x128xf32> -> vector<8x128xf32>
    %13 = arith.addf %10, %12 : vector<8x128xf32>
    %cst_11 = arith.constant dense<0.000000e+00> : vector<128xf32>
    %14 = vector.multi_reduction <add>, %13, %cst_11 [0] : vector<8x128xf32> to vector<128xf32>
    %15 = vector.shape_cast %14 : vector<128xf32> to vector<1x128xf32>
    %cst_12 = arith.constant 8.000000e+00 : f32
    %16 = vector.broadcast %cst_12 : f32 to vector<1x128xf32>
    %17 = arith.divf %15, %16 : vector<1x128xf32>
    %18 = arith.mulf %13, %13 : vector<8x128xf32>
    %cst_13 = arith.constant dense<0.000000e+00> : vector<128xf32>
    %19 = vector.multi_reduction <add>, %18, %cst_13 [0] : vector<8x128xf32> to vector<128xf32>
    %20 = vector.shape_cast %19 : vector<128xf32> to vector<1x128xf32>
    %cst_14 = arith.constant 8.000000e+00 : f32
    %21 = vector.broadcast %cst_14 : f32 to vector<1x128xf32>
    %22 = arith.divf %20, %21 : vector<1x128xf32>
    %23 = arith.mulf %17, %17 : vector<1x128xf32>
    %24 = arith.subf %22, %23 : vector<1x128xf32>
    %c0_15 = arith.constant 0 : index
    %c0_16 = arith.constant 0 : index
    %25 = vector.load %arg5[%c0_15, %c0_16] : memref<1x128xf32, #tpu.memory_space<vmem>>, vector<1x128xf32>
    %cst_17 = arith.constant 9.99999974E-6 : f32
    %26 = vector.broadcast %cst_17 : f32 to vector<1x128xf32>
    %27 = arith.addf %24, %26 : vector<1x128xf32>
    %28 = math.rsqrt %27 : vector<1x128xf32>
    %29 = arith.mulf %25, %28 : vector<1x128xf32>
    %c0_18 = arith.constant 0 : index
    %c0_19 = arith.constant 0 : index
    %30 = vector.load %arg6[%c0_18, %c0_19] : memref<1x128xf32, #tpu.memory_space<vmem>>, vector<1x128xf32>
    %31 = arith.mulf %17, %29 : vector<1x128xf32>
    %32 = arith.subf %30, %31 : vector<1x128xf32>
    %33 = vector.broadcast %29 : vector<1x128xf32> to vector<8x128xf32>
    %34 = arith.mulf %13, %33 : vector<8x128xf32>
    %35 = vector.broadcast %32 : vector<1x128xf32> to vector<8x128xf32>
    %36 = arith.addf %34, %35 : vector<8x128xf32>
    %cst_20 = arith.constant 0.000000e+00 : f32
    %37 = vector.broadcast %cst_20 : f32 to vector<8x128xf32>
    %38 = arith.maximumf %36, %37 : vector<8x128xf32>
    %c0_21 = arith.constant 0 : index
    %c0_22 = arith.constant 0 : index
    %39 = vector.load %arg7[%c0_21, %c0_22] : memref<128x128xf32, #tpu.memory_space<vmem>>, vector<128x128xf32>
    %cst_23 = arith.constant dense<0.000000e+00> : vector<8x128xf32>
    %40 = tpu.matmul %38, %39, %cst_23 {dimension_numbers = #tpu.dot_dimension_numbers<[1], [0], [0], [1], [0, 0, 1, 1], [], []>} : vector<8x128xf32>, vector<128x128xf32>, vector<8x128xf32> -> vector<8x128xf32>
    %cst_24 = arith.constant dense<0.000000e+00> : vector<128xf32>
    %41 = vector.multi_reduction <add>, %40, %cst_24 [0] : vector<8x128xf32> to vector<128xf32>
    %42 = vector.shape_cast %41 : vector<128xf32> to vector<1x128xf32>
    %cst_25 = arith.constant 8.000000e+00 : f32
    %43 = vector.broadcast %cst_25 : f32 to vector<1x128xf32>
    %44 = arith.divf %42, %43 : vector<1x128xf32>
    %45 = arith.mulf %40, %40 : vector<8x128xf32>
    %cst_26 = arith.constant dense<0.000000e+00> : vector<128xf32>
    %46 = vector.multi_reduction <add>, %45, %cst_26 [0] : vector<8x128xf32> to vector<128xf32>
    %47 = vector.shape_cast %46 : vector<128xf32> to vector<1x128xf32>
    %cst_27 = arith.constant 8.000000e+00 : f32
    %48 = vector.broadcast %cst_27 : f32 to vector<1x128xf32>
    %49 = arith.divf %47, %48 : vector<1x128xf32>
    %50 = arith.mulf %44, %44 : vector<1x128xf32>
    %51 = arith.subf %49, %50 : vector<1x128xf32>
    %c0_28 = arith.constant 0 : index
    %c0_29 = arith.constant 0 : index
    %52 = vector.load %arg8[%c0_28, %c0_29] : memref<1x128xf32, #tpu.memory_space<vmem>>, vector<1x128xf32>
    %cst_30 = arith.constant 9.99999974E-6 : f32
    %53 = vector.broadcast %cst_30 : f32 to vector<1x128xf32>
    %54 = arith.addf %51, %53 : vector<1x128xf32>
    %55 = math.rsqrt %54 : vector<1x128xf32>
    %56 = arith.mulf %52, %55 : vector<1x128xf32>
    %c0_31 = arith.constant 0 : index
    %c0_32 = arith.constant 0 : index
    %57 = vector.load %arg9[%c0_31, %c0_32] : memref<1x128xf32, #tpu.memory_space<vmem>>, vector<1x128xf32>
    %58 = arith.mulf %44, %56 : vector<1x128xf32>
    %59 = arith.subf %57, %58 : vector<1x128xf32>
    %60 = vector.broadcast %56 : vector<1x128xf32> to vector<8x128xf32>
    %61 = arith.mulf %40, %60 : vector<8x128xf32>
    %62 = vector.broadcast %59 : vector<1x128xf32> to vector<8x128xf32>
    %63 = arith.addf %61, %62 : vector<8x128xf32>
    %cst_33 = arith.constant 0.000000e+00 : f32
    %64 = vector.broadcast %cst_33 : f32 to vector<8x128xf32>
    %65 = arith.maximumf %63, %64 : vector<8x128xf32>
    %c0_34 = arith.constant 0 : index
    %c0_35 = arith.constant 0 : index
    %66 = vector.load %arg10[%c0_34, %c0_35] : memref<128x128xf32, #tpu.memory_space<vmem>>, vector<128x128xf32>
    %cst_36 = arith.constant dense<0.000000e+00> : vector<8x128xf32>
    %67 = tpu.matmul %65, %66, %cst_36 {dimension_numbers = #tpu.dot_dimension_numbers<[1], [0], [0], [1], [0, 0, 1, 1], [], []>} : vector<8x128xf32>, vector<128x128xf32>, vector<8x128xf32> -> vector<8x128xf32>
    %cst_37 = arith.constant dense<0.000000e+00> : vector<128xf32>
    %68 = vector.multi_reduction <add>, %67, %cst_37 [0] : vector<8x128xf32> to vector<128xf32>
    %69 = vector.shape_cast %68 : vector<128xf32> to vector<1x128xf32>
    %cst_38 = arith.constant 8.000000e+00 : f32
    %70 = vector.broadcast %cst_38 : f32 to vector<1x128xf32>
    %71 = arith.divf %69, %70 : vector<1x128xf32>
    %72 = arith.mulf %67, %67 : vector<8x128xf32>
    %cst_39 = arith.constant dense<0.000000e+00> : vector<128xf32>
    %73 = vector.multi_reduction <add>, %72, %cst_39 [0] : vector<8x128xf32> to vector<128xf32>
    %74 = vector.shape_cast %73 : vector<128xf32> to vector<1x128xf32>
    %cst_40 = arith.constant 8.000000e+00 : f32
    %75 = vector.broadcast %cst_40 : f32 to vector<1x128xf32>
    %76 = arith.divf %74, %75 : vector<1x128xf32>
    %77 = arith.mulf %71, %71 : vector<1x128xf32>
    %78 = arith.subf %76, %77 : vector<1x128xf32>
    %c0_41 = arith.constant 0 : index
    %c0_42 = arith.constant 0 : index
    %79 = vector.load %arg11[%c0_41, %c0_42] : memref<1x128xf32, #tpu.memory_space<vmem>>, vector<1x128xf32>
    %cst_43 = arith.constant 9.99999974E-6 : f32
    %80 = vector.broadcast %cst_43 : f32 to vector<1x128xf32>
    %81 = arith.addf %78, %80 : vector<1x128xf32>
    %82 = math.rsqrt %81 : vector<1x128xf32>
    %83 = arith.mulf %79, %82 : vector<1x128xf32>
    %c0_44 = arith.constant 0 : index
    %c0_45 = arith.constant 0 : index
    %84 = vector.load %arg12[%c0_44, %c0_45] : memref<1x128xf32, #tpu.memory_space<vmem>>, vector<1x128xf32>
    %85 = arith.mulf %71, %83 : vector<1x128xf32>
    %86 = arith.subf %84, %85 : vector<1x128xf32>
    %87 = vector.broadcast %83 : vector<1x128xf32> to vector<8x128xf32>
    %88 = arith.mulf %67, %87 : vector<8x128xf32>
    %89 = vector.broadcast %86 : vector<1x128xf32> to vector<8x128xf32>
    %90 = arith.addf %88, %89 : vector<8x128xf32>
    %cst_46 = arith.constant 0.000000e+00 : f32
    %91 = vector.broadcast %cst_46 : f32 to vector<8x128xf32>
    %92 = arith.maximumf %90, %91 : vector<8x128xf32>
    %c0_47 = arith.constant 0 : index
    %c0_48 = arith.constant 0 : index
    %93 = vector.load %arg13[%c0_47, %c0_48] : memref<128x128xf32, #tpu.memory_space<vmem>>, vector<128x128xf32>
    %cst_49 = arith.constant dense<0.000000e+00> : vector<8x128xf32>
    %94 = tpu.matmul %92, %93, %cst_49 {dimension_numbers = #tpu.dot_dimension_numbers<[1], [0], [0], [1], [0, 0, 1, 1], [], []>} : vector<8x128xf32>, vector<128x128xf32>, vector<8x128xf32> -> vector<8x128xf32>
    %c0_50 = arith.constant 0 : index
    %c0_51 = arith.constant 0 : index
    %95 = vector.load %arg14[%c0_50, %c0_51] : memref<1x128xf32, #tpu.memory_space<vmem>>, vector<1x128xf32>
    %96 = vector.broadcast %95 : vector<1x128xf32> to vector<8x128xf32>
    %97 = arith.addf %94, %96 : vector<8x128xf32>
    %98 = math.tanh %97 : vector<8x128xf32>
    %c0_52 = arith.constant 0 : index
    %c0_53 = arith.constant 0 : index
    %99 = vector.load %arg15[%c0_52, %c0_53] : memref<8x128xf32, #tpu.memory_space<vmem>>, vector<8x128xf32>
    tpu.vector_store %arg15[%c0_52, %c0_53], %98 {strides = array<i32>} : memref<8x128xf32, #tpu.memory_space<vmem>>, vector<8x128xf32>,
    return
  }
}

</mosaic_0001>

<bundles_post_ra>
// kernel: tpu_custom_call.1
= control target key start
LH: loop header
LB: loop body
LE: loop exit
PB: predicated region body
PF: predicated region fallthrough
CT: control target
= control target key end

     0   :  { %20 = vsyncpa [#allocation3], 0  ;;  %s776_s0 = inlined_call_operand.vmem [shape: s32[8,1], index: 0, kind: input, shape index: {}]   ;;  %s777_s1 = inlined_call_operand.vmem [shape: f32[8,16], index: 1, kind: input, shape index: {}]   ;;  %s778_s2 = inlined_call_operand.vmem [shape: f32[10,8], index: 2, kind: input, shape index: {}]   ;;  %s779_s3 = inlined_call_operand.vmem [shape: f32[16,128], index: 3, kind: input, shape index: {}]   ;;  %s780_s4 = inlined_call_operand.hbm [shape: f32[8,128], index: 4, kind: input, shape index: {}]   ;;  %s781_s5 = inlined_call_operand.vmem [shape: f32[1,128], index: 5, kind: input, shape index: {}]   ;;  %s782_s6 = inlined_call_operand.vmem [shape: f32[1,128], index: 6, kind: input, shape index: {}]   ;;  %s783_s7 = inlined_call_operand.hbm [shape: f32[128,128], index: 7, kind: input, shape index: {}]   ;;  %s784_s8 = inlined_call_operand.vmem [shape: f32[1,128], index: 8, kind: input, shape index: {}]   ;;  %s785_s9 = inlined_call_operand.vmem [shape: f32[1,128], index: 9, kind: input, shape index: {}]   ;;  %s786_s10 = inlined_call_operand.hbm [shape: f32[128,128], index: 10, kind: input, shape index: {}]   ;;  %s787_s11 = inlined_call_operand.vmem [shape: f32[1,128], index: 11, kind: input, shape index: {}]   ;;  %s788_s12 = inlined_call_operand.vmem [shape: f32[1,128], index: 12, kind: input, shape index: {}]   ;;  %s789_s13 = inlined_call_operand.hbm [shape: f32[128,128], index: 13, kind: input, shape index: {}]   ;;  %s790_s14 = inlined_call_operand.vmem [shape: f32[1,128], index: 14, kind: input, shape index: {}]   ;;  %s791_s15 = inlined_call_operand.hbm [shape: f32[8,128], index: 15, kind: output, shape index: {}]  }
   0x1   :  { %21 = vsyncpa [#allocation6], 0 }
   0x2   :  { %22 = vsyncpa [#allocation9], 0  ;;  %s51_s20 = sshll.u32 %s783_s7, 4  ;;  %s52_s20 = int_to_ptr.hbm [resolvable:$true] %s51_s20 }
   0x3   :  { %23 = vsyncpa [#allocation4], 0  ;;  %s624_s21 = smov [#allocation5]   ;;  %s37_s25 = sshll.u32 %s780_s4, 4  ;;  %s38_s25 = int_to_ptr.hbm [resolvable:$true] %s37_s25 }
   0x4   :  { %s53_s22 = sshll.u32 %s624_s21, 4  ;;  %s625_s26 = smov 128   ;;  %s54_s22 = int_to_ptr.vmem [resolvable:$true] %s53_s22 }
   0x5   :  { %s626_s27 = smov 8   ;;  %s627_s28 = smov [#allocation2]  }
   0x6   :  { %59 = dma.hbm_to_vmem [thread:$0]  %s52_s20, 2048, %s54_s22, [#allocation6], %s625_s26, %s625_s26, %s626_s27  }
   0x7   :  { %s39_s29 = sshll.u32 %s627_s28, 4  ;;  %s68_s17 = sshll.u32 %s786_s10, 4  ;;  %s40_s29 = int_to_ptr.vmem [resolvable:$true] %s39_s29  ;;  %s69_s17 = int_to_ptr.hbm [resolvable:$true] %s68_s17 }
   0x8   :  { %42 = dma.hbm_to_vmem [thread:$0]  %s38_s25, 128, %s40_s29, [#allocation3]  }
   0x9   :  { %s85_s19 = sshll.u32 %s789_s13, 4  ;;  %s628_s21 = smov [#allocation7]   ;;  %s86_s19 = int_to_ptr.hbm [resolvable:$true] %s85_s19 }
   0xa   :  { %s70_s23 = sshll.u32 %s628_s21, 4  ;;  %s629_s4 = smov [#allocation8]   ;;  %s71_s23 = int_to_ptr.vmem [resolvable:$true] %s70_s23 }
   0xb   :  { %76 = dma.hbm_to_vmem [thread:$0]  %s69_s17, 2048, %s71_s23, [#allocation6], %s625_s26, %s625_s26, %s626_s27  }
   0xc   :  { %s87_s20 = sshll.u32 %s629_s4, 4  ;;  %s88_s20 = int_to_ptr.vmem [resolvable:$true] %s87_s20 }
   0xd   :  { %93 = dma.hbm_to_vmem [thread:$0]  %s86_s19, 2048, %s88_s20, [#allocation9], %s625_s26, %s625_s26, %s626_s27  }
   0xe   :  { %616 = dma.done.wait [#allocation3], 128  }
   0xf   :  { %617 = vsyncadd [#allocation3], 4294967168 }
  0x10   :  { %618 = dma.done.wait [#allocation6], 4096  }
  0x11   :  { %619 = vsyncadd [#allocation6], 4294963200 }
  0x12   :  { %620 = dma.done.wait [#allocation9], 2048  }
  0x13   :  { %621 = vsyncadd [#allocation9], 4294965248  ;;  %v630_v0 = vmov 0   ;;  %vm127_vm0 = vcmask 1041408   ;;  %v114_v1 = vld [vmem:[%s776_s0] sm:$0xff]  ;;  %v112_v5 = vlaneseq  ;;  %vm123_vm1 = vcmask 80896  }
  0x14   :  { %484 = vset.pattern.permute.xlu0 %v630_v0  ;;  %v122_v2 = vld [vmem:[%s778_s2 + $0x8] sm:$0x3]  ;;  %v121_v3 = vld [vmem:[%s778_s2] sm:$0xff]  ;;  %v631_v8 = vmov 0.0   ;;  %vm155_vm3 = vcmask 64512   ;;  %vm179_vm4 = vcmask 130048  }
  0x15   :  { %116 = vperm.xlu0 %484, %v114_v1   ;;  %470 = vmatpush.msk.msra.mxu2 %vm127_vm0, %v122_v2  ;;  %v154_v4 = vld [vmem:[#allocation2] sm:$0xff]  ;;  %v113_v6 = vand.u32 127, %v112_v5  ;;  %v153_v10 = vld [vmem:[%s779_s3 + $0x8] sm:$0xff]  ;;  %v266_v15 = vld [vmem:[#allocation5 + $0x70] sm:$0xff]  ;;  %v632_v18 = vmov 8.0  }
  0x16   :  { %v152_v11 = vld [vmem:[%s779_s3] sm:$0xff]  ;;  %v265_v16 = vld [vmem:[#allocation5 + $0x68] sm:$0xff]  ;;  %v264_v17 = vld [vmem:[#allocation5 + $0x60] sm:$0xff]  ;;  %486 = vrcp.f32 %v632_v18 }
  0x17   :  { %146 = vmatpush.msra.mxu2 %v121_v3  ;;  %v151_v13 = vld [vmem:[%s777_s1] sm:$0xff]  ;;  %v262_v20 = vld [vmem:[#allocation5 + $0x50] sm:$0xff]  ;;  %v261_v23 = vld [vmem:[#allocation5 + $0x48] sm:$0xff] }
  0x18   :  { %v267_v14 = vld [vmem:[#allocation5 + $0x78] sm:$0xff]  ;;  %v260_v24 = vld [vmem:[#allocation5 + $0x40] sm:$0xff]  ;;  %v258_v27 = vld [vmem:[#allocation5 + $0x30] sm:$0xff] }
  0x19   :  { %174 = vmatpush.msrb.mxu2 %v154_v4  ;;  %268 = vmatpush.msra.mxu3 %v267_v14  ;;  %v263_v19 = vld [vmem:[#allocation5 + $0x58] sm:$0xff]  ;;  %v257_v31 = vld [vmem:[#allocation5 + $0x28] sm:$0xff]  ;;  %v256_v34 = vld [vmem:[#allocation5 + $0x20] sm:$0xff] }
  0x1a   :  { %v259_v26 = vld [vmem:[#allocation5 + $0x38] sm:$0xff]  ;;  %v254_v41 = vld [vmem:[#allocation5 + $0x10] sm:$0xff]  ;;  %v253_v45 = vld [vmem:[#allocation5 + $0x8] sm:$0xff] }
  0x1b   :  { %269 = vmatpush.msra.mxu3 %v266_v15  ;;  %v255_v38 = vld [vmem:[#allocation5 + $0x18] sm:$0xff]  ;;  %v252_v47 = vld [vmem:[#allocation5] sm:$0xff] }
  0x1c   :  { %v487_v22 = vpop.eup %486  ;;  %v227_v63 = vld [vmem:[%s781_s5] sm:$0x1]  ;;  %v342_v14 = vld [vmem:[#allocation7 + $0x60] sm:$0xff] }
  0x1d   :  { %270 = vmatpush.msra.mxu3 %v265_v16  ;;  %v210_v25 = vmul.f32 8.0, %v487_v22  ;;  %vm214_vm5 = vweird.f32 %v487_v22  ;;  %v240_v3 = vld [vmem:[%s782_s6] sm:$0x1]  ;;  %v340_v16 = vld [vmem:[#allocation7 + $0x50] sm:$0xff] }
  0x1e   :  { %v341_v15 = vld [vmem:[#allocation7 + $0x58] sm:$0xff] }
  0x1f   :  { %271 = vmatpush.msra.mxu3 %v264_v17  ;;  %v211_v29 = vsub.f32 1.0, %v210_v25  ;;  %v339_v17 = vld [vmem:[#allocation7 + $0x48] sm:$0xff] }
  0x21   :  { %272 = vmatpush.msra.mxu3 %v263_v19  ;;  %v212_v35 = vmul.f32 %v487_v22, %v211_v29 }
  0x23   :  { %273 = vmatpush.msra.mxu3 %v262_v20  ;;  %v213_v42 = vadd.f32 %v487_v22, %v212_v35 }
  0x25   :  { %274 = vmatpush.msra.mxu3 %v261_v23  ;;  %v744_v49 = vsel %vm214_vm5, %v487_v22, %v213_v42 }
  0x27   :  { %275 = vmatpush.msra.mxu3 %v260_v24  ;;  %v337_v24 = vld [vmem:[#allocation7 + $0x38] sm:$0xff] }
  0x29   :  { %276 = vmatpush.msra.mxu3 %v259_v26 }
  0x2b   :  { %277 = vmatpush.msra.mxu3 %v258_v27  ;;  %v336_v27 = vld [vmem:[#allocation7 + $0x30] sm:$0xff] }
  0x2d   :  { %278 = vmatpush.msra.mxu3 %v257_v31 }
  0x2f   :  { %279 = vmatpush.msra.mxu3 %v256_v34 }
  0x31   :  { %280 = vmatpush.msra.mxu3 %v255_v38 }
  0x33   :  { %281 = vmatpush.msra.mxu3 %v254_v41 }
  0x35   :  { %282 = vmatpush.msra.mxu3 %v253_v45 }
  0x37   :  { %283 = vmatpush.msra.mxu3 %v252_v47 }
  0x87   :  { %v117_v7 = vpop.permute.xlu0 %116 }
  0x88   :  { %vm118_vm2 = vcmp.eq.s32.totalorder %v113_v6, %v117_v7 }
  0x89   :  { %v469_v9 = vsel %vm118_vm2, 1.0, %v631_v8 }
  0x8a   :  { %471 = vmatmul.msk.f32.vlgmr.msra.gmra.mxu2 %vm123_vm1, %v469_v9 }
  0x8b   :  { %197 = vmatpush.msra.mxu2 %v153_v10 }
  0x8d   :  { %198 = vmatpush.msra.mxu2 %v152_v11  ;;  %v345_v11 = vld [vmem:[#allocation7 + $0x78] sm:$0xff] }
  0x8e   :  { %346 = vmatpush.msra.mxu1 %v345_v11 }
 0x10d   :  { %v148_v12 = vpop.f32.mrf.mxu2 }
 0x10e   :  { %472 = vmatmul.msk.f32.vlgmr.msrb.gmra.mxu2 %vm155_vm3, %v148_v12  ;;  %v344_v12 = vld [vmem:[#allocation7 + $0x70] sm:$0xff] }
 0x10f   :  { %347 = vmatpush.msra.mxu1 %v344_v12 }
 0x116   :  { %473 = vmatmul.msk.f32.vlgmr.msra.gmra.mxu2 %vm179_vm4, %v151_v13  ;;  %v343_v13 = vld [vmem:[#allocation7 + $0x68] sm:$0xff] }
 0x117   :  { %348 = vmatpush.msra.mxu1 %v343_v13  ;;  %v415_v13 = vld [vmem:[#allocation8 + $0x38] sm:$0xff] }
 0x119   :  { %349 = vmatpush.msra.mxu1 %v342_v14 }
 0x11b   :  { %350 = vmatpush.msra.mxu1 %v341_v15 }
 0x11d   :  { %351 = vmatpush.msra.mxu1 %v340_v16  ;;  %v414_v16 = vld [vmem:[#allocation8 + $0x30] sm:$0xff] }
 0x11f   :  { %352 = vmatpush.msra.mxu1 %v339_v17 }
 0x191   :  { %v176_v21 = vpop.f32.mrf.mxu2 }
 0x199   :  { %v200_v28 = vpop.f32.mrf.mxu2 }
 0x19a   :  { %v201_v30 = vadd.f32 %v200_v28, %v176_v21  ;;  %v338_v21 = vld [vmem:[#allocation7 + $0x40] sm:$0xff] }
 0x19b   :  { %353 = vmatpush.msra.mxu1 %v338_v21 }
 0x19c   :  { %v203_v32 = vrot.slane %v201_v30, 4  ;;  %v217_v33 = vmul.f32 %v201_v30, %v201_v30 }
 0x19d   :  { %354 = vmatpush.msra.mxu1 %v337_v24 }
 0x19e   :  { %v204_v36 = vadd.f32 %v203_v32, %v201_v30  ;;  %v218_v37 = vrot.slane %v217_v33, 4 }
 0x19f   :  { %355 = vmatpush.msra.mxu1 %v336_v27 }
 0x1a0   :  { %v205_v39 = vrot.slane %v204_v36, 2  ;;  %v219_v40 = vadd.f32 %v218_v37, %v217_v33  ;;  %v334_v33 = vld [vmem:[#allocation7 + $0x20] sm:$0xff]  ;;  %v332_v37 = vld [vmem:[#allocation7 + $0x10] sm:$0xff] }
 0x1a2   :  { %v206_v43 = vadd.f32 %v205_v39, %v204_v36  ;;  %v220_v44 = vrot.slane %v219_v40, 2  ;;  %v333_v36 = vld [vmem:[#allocation7 + $0x18] sm:$0xff] }
 0x1a4   :  { %v221_v46 = vadd.f32 %v220_v44, %v219_v40  ;;  %v207_v48 = vrot.slane %v206_v43, 1  ;;  %v331_v40 = vld [vmem:[#allocation7 + $0x8] sm:$0xff] }
 0x1a6   :  { %v222_v50 = vrot.slane %v221_v46, 1  ;;  %v208_v51 = vadd.f32 %v207_v48, %v206_v43  ;;  %v330_v43 = vld [vmem:[#allocation7] sm:$0xff] }
 0x1a8   :  { %v223_v52 = vadd.f32 %v222_v50, %v221_v46  ;;  %v216_v53 = vmul.f32 %v744_v49, %v208_v51 }
 0x1aa   :  { %v224_v54 = vmul.f32 %v223_v52, %v744_v49  ;;  %v225_v55 = vmul.f32 %v216_v53, %v216_v53  ;;  %v305_v52 = vld [vmem:[%s784_s8] sm:$0x1] }
 0x1ac   :  { %v226_v56 = vsub.f32 %v224_v54, %v225_v55 }
 0x1ae   :  { %v228_v57 = vadd.f32 1e-05, %v226_v56  ;;  %v318_v56 = vld [vmem:[%s785_s9] sm:$0x1] }
 0x1b0   :  { %488 = vrsqrt.f32 %v228_v57  ;;  %vm235_vm7 = vweird.f32 %v228_v57 }
 0x1b6   :  { %v489_v58 = vpop.eup %488 }
 0x1b7   :  { %v230_v59 = vmul.f32 %v489_v58, %v228_v57  ;;  %vm236_vm6 = vweird.f32 %v489_v58 }
 0x1b8   :  { %vm237_vm8 = vmor %vm235_vm7, %vm236_vm6 }
 0x1b9   :  { %v231_v60 = vmul.f32 %v489_v58, %v230_v59 }
 0x1bb   :  { %v232_v61 = vmul.f32 0.5, %v231_v60 }
 0x1bd   :  { %v233_v62 = vsub.f32 1.5, %v232_v61 }
 0x1bf   :  { %v234_v0 = vmul.f32 %v489_v58, %v233_v62 }
 0x1c1   :  { %v238_v1 = vsel %vm237_vm8, %v489_v58, %v234_v0  ;;  %v423_v0 = vld [vmem:[#allocation8 + $0x78] sm:$0xff] }
 0x1c2   :  { %v239_v2 = vmul.f32 %v238_v1, %v227_v63  ;;  %428 = vmatpush.msra.mxu0 %v423_v0  ;;  %v422_v1 = vld [vmem:[#allocation8 + $0x70] sm:$0xff] }
 0x1c4   :  { %v241_v4 = vmul.f32 %v239_v2, %v216_v53  ;;  %v244_v5 = vperm.slane %v239_v2, 0  ;;  %429 = vmatpush.msra.mxu0 %v422_v1  ;;  %v421_v2 = vld [vmem:[#allocation8 + $0x68] sm:$0xff] }
 0x1c6   :  { %v242_v6 = vsub.f32 %v240_v3, %v241_v4  ;;  %v246_v7 = vmul.f32 %v244_v5, %v201_v30  ;;  %v335_v30 = vld [vmem:[#allocation7 + $0x28] sm:$0xff]  ;;  %430 = vmatpush.msra.mxu0 %v421_v2  ;;  %v420_v3 = vld [vmem:[#allocation8 + $0x60] sm:$0xff]  ;;  %v419_v4 = vld [vmem:[#allocation8 + $0x58] sm:$0xff] }
 0x1c7   :  { %356 = vmatpush.msra.mxu1 %v335_v30  ;;  %v418_v5 = vld [vmem:[#allocation8 + $0x50] sm:$0xff] }
 0x1c8   :  { %v248_v8 = vperm.slane %v242_v6, 0  ;;  %431 = vmatpush.msra.mxu0 %v420_v3  ;;  %v417_v6 = vld [vmem:[#allocation8 + $0x48] sm:$0xff] }
 0x1c9   :  { %357 = vmatpush.msra.mxu1 %v334_v33 }
 0x1ca   :  { %v250_v9 = vadd.f32 %v248_v8, %v246_v7  ;;  %432 = vmatpush.msra.mxu0 %v419_v4 }
 0x1cb   :  { %358 = vmatpush.msra.mxu1 %v333_v36 }
 0x1cc   :  { %v251_v10 = vmax.f32 %v250_v9, 0.0  ;;  %433 = vmatpush.msra.mxu0 %v418_v5 }
 0x1cd   :  { %359 = vmatpush.msra.mxu1 %v332_v37 }
 0x1ce   :  { %284 = vmatmul.f32.vlgmr.msra.gmra.mxu3 %v251_v10  ;;  %434 = vmatpush.msra.mxu0 %v417_v6  ;;  %v416_v10 = vld [vmem:[#allocation8 + $0x40] sm:$0xff] }
 0x1cf   :  { %360 = vmatpush.msra.mxu1 %v331_v40  ;;  %v383_v40 = vld [vmem:[%s787_s11] sm:$0x1]  ;;  %s633_s11 = smov [#allocation10]  }
 0x1d0   :  { %435 = vmatpush.msra.mxu0 %v416_v10  ;;  %s455_s20 = sshll.u32 %s633_s11, 4  ;;  %s456_s20 = int_to_ptr.vmem [resolvable:$true] %s455_s20 }
 0x1d1   :  { %361 = vmatpush.msra.mxu1 %v330_v43  ;;  %v396_v43 = vld [vmem:[%s788_s12] sm:$0x1]  ;;  %s457_s12 = sshll.u32 %s791_s15, 4  ;;  %s458_s12 = int_to_ptr.hbm [resolvable:$true] %s457_s12 }
 0x1d2   :  { %436 = vmatpush.msra.mxu0 %v415_v13 }
 0x1d4   :  { %437 = vmatpush.msra.mxu0 %v414_v16 }
 0x251   :  { %v285_v18 = vpop.f32.mrf.mxu3 }
 0x252   :  { %v288_v19 = vrot.slane %v285_v18, 4  ;;  %v295_v20 = vmul.f32 %v285_v18, %v285_v18 }
 0x254   :  { %v289_v22 = vadd.f32 %v288_v19, %v285_v18  ;;  %v296_v23 = vrot.slane %v295_v20, 4  ;;  %v413_v19 = vld [vmem:[#allocation8 + $0x28] sm:$0xff] }
 0x255   :  { %438 = vmatpush.msra.mxu0 %v413_v19 }
 0x256   :  { %v290_v25 = vrot.slane %v289_v22, 2  ;;  %v297_v26 = vadd.f32 %v296_v23, %v295_v20 }
 0x258   :  { %v291_v28 = vadd.f32 %v290_v25, %v289_v22  ;;  %v298_v29 = vrot.slane %v297_v26, 2  ;;  %v412_v22 = vld [vmem:[#allocation8 + $0x20] sm:$0xff]  ;;  %v411_v25 = vld [vmem:[#allocation8 + $0x18] sm:$0xff] }
 0x259   :  { %439 = vmatpush.msra.mxu0 %v412_v22 }
 0x25a   :  { %v292_v31 = vrot.slane %v291_v28, 1  ;;  %v299_v32 = vadd.f32 %v298_v29, %v297_v26  ;;  %v410_v26 = vld [vmem:[#allocation8 + $0x10] sm:$0xff]  ;;  %v409_v29 = vld [vmem:[#allocation8 + $0x8] sm:$0xff] }
 0x25b   :  { %440 = vmatpush.msra.mxu0 %v411_v25 }
 0x25c   :  { %v293_v34 = vadd.f32 %v292_v31, %v291_v28  ;;  %v300_v35 = vrot.slane %v299_v32, 1 }
 0x25d   :  { %441 = vmatpush.msra.mxu0 %v410_v26 }
 0x25e   :  { %v294_v38 = vmul.f32 %v293_v34, %v744_v49  ;;  %v301_v39 = vadd.f32 %v300_v35, %v299_v32  ;;  %v408_v32 = vld [vmem:[#allocation8] sm:$0xff] }
 0x25f   :  { %442 = vmatpush.msra.mxu0 %v409_v29 }
 0x260   :  { %v302_v41 = vmul.f32 %v301_v39, %v744_v49  ;;  %v303_v42 = vmul.f32 %v294_v38, %v294_v38 }
 0x261   :  { %443 = vmatpush.msra.mxu0 %v408_v32 }
 0x262   :  { %v304_v44 = vsub.f32 %v302_v41, %v303_v42 }
 0x264   :  { %v306_v45 = vadd.f32 1e-05, %v304_v44 }
 0x266   :  { %490 = vrsqrt.f32 %v306_v45  ;;  %vm313_vm10 = vweird.f32 %v306_v45 }
 0x26c   :  { %v491_v46 = vpop.eup %490 }
 0x26d   :  { %v308_v47 = vmul.f32 %v491_v46, %v306_v45  ;;  %vm314_vm9 = vweird.f32 %v491_v46 }
 0x26e   :  { %vm315_vm11 = vmor %vm313_vm10, %vm314_vm9 }
 0x26f   :  { %v309_v48 = vmul.f32 %v491_v46, %v308_v47 }
 0x271   :  { %v310_v50 = vmul.f32 0.5, %v309_v48 }
 0x273   :  { %v311_v51 = vsub.f32 1.5, %v310_v50 }
 0x275   :  { %v312_v53 = vmul.f32 %v491_v46, %v311_v51 }
 0x277   :  { %v316_v54 = vsel %vm315_vm11, %v491_v46, %v312_v53 }
 0x278   :  { %v317_v55 = vmul.f32 %v316_v54, %v305_v52  ;;  %v485_v52 = vld [vmem:[%s790_s14] ss:$0 sm:$0xff] }
 0x27a   :  { %v322_v57 = vperm.slane %v317_v55, 0  ;;  %v319_v58 = vmul.f32 %v317_v55, %v294_v38 }
 0x27c   :  { %v320_v59 = vsub.f32 %v318_v56, %v319_v58  ;;  %v324_v60 = vmul.f32 %v322_v57, %v285_v18 }
 0x27e   :  { %v326_v61 = vperm.slane %v320_v59, 0 }
 0x280   :  { %v328_v62 = vadd.f32 %v326_v61, %v324_v60 }
 0x282   :  { %v329_v63 = vmax.f32 %v328_v62, 0.0 }
 0x284   :  { %362 = vmatmul.f32.vlgmr.msra.gmra.mxu1 %v329_v63 }
 0x301   :  { %v363_v7 = vpop.f32.mrf.mxu1 }
 0x302   :  { %v366_v8 = vrot.slane %v363_v7, 4  ;;  %v373_v9 = vmul.f32 %v363_v7, %v363_v7 }
 0x304   :  { %v367_v11 = vadd.f32 %v366_v8, %v363_v7  ;;  %v374_v12 = vrot.slane %v373_v9, 4 }
 0x306   :  { %v368_v14 = vrot.slane %v367_v11, 2  ;;  %v375_v15 = vadd.f32 %v374_v12, %v373_v9 }
 0x308   :  { %v369_v17 = vadd.f32 %v368_v14, %v367_v11  ;;  %v376_v18 = vrot.slane %v375_v15, 2 }
 0x30a   :  { %v370_v20 = vrot.slane %v369_v17, 1  ;;  %v377_v21 = vadd.f32 %v376_v18, %v375_v15 }
 0x30c   :  { %v371_v23 = vadd.f32 %v370_v20, %v369_v17  ;;  %v378_v24 = vrot.slane %v377_v21, 1 }
 0x30e   :  { %v372_v27 = vmul.f32 %v371_v23, %v744_v49  ;;  %v379_v28 = vadd.f32 %v378_v24, %v377_v21 }
 0x310   :  { %v380_v30 = vmul.f32 %v379_v28, %v744_v49  ;;  %v381_v31 = vmul.f32 %v372_v27, %v372_v27 }
 0x312   :  { %v382_v33 = vsub.f32 %v380_v30, %v381_v31 }
 0x314   :  { %v384_v34 = vadd.f32 1e-05, %v382_v33 }
 0x316   :  { %492 = vrsqrt.f32 %v384_v34  ;;  %vm391_vm13 = vweird.f32 %v384_v34 }
 0x31c   :  { %v493_v35 = vpop.eup %492 }
 0x31d   :  { %v386_v36 = vmul.f32 %v493_v35, %v384_v34  ;;  %vm392_vm12 = vweird.f32 %v493_v35 }
 0x31e   :  { %vm393_vm14 = vmor %vm391_vm13, %vm392_vm12 }
 0x31f   :  { %v387_v37 = vmul.f32 %v493_v35, %v386_v36 }
 0x321   :  { %v388_v38 = vmul.f32 0.5, %v387_v37 }
 0x323   :  { %v389_v39 = vsub.f32 1.5, %v388_v38 }
 0x325   :  { %v390_v41 = vmul.f32 %v493_v35, %v389_v39 }
 0x327   :  { %v394_v49 = vsel %vm393_vm14, %v493_v35, %v390_v41 }
 0x328   :  { %v395_v42 = vmul.f32 %v394_v49, %v383_v40 }
 0x32a   :  { %v400_v44 = vperm.slane %v395_v42, 0  ;;  %v397_v45 = vmul.f32 %v395_v42, %v372_v27 }
 0x32c   :  { %v398_v46 = vsub.f32 %v396_v43, %v397_v45  ;;  %v402_v47 = vmul.f32 %v400_v44, %v363_v7 }
 0x32e   :  { %v404_v48 = vperm.slane %v398_v46, 0 }
 0x330   :  { %v406_v50 = vadd.f32 %v404_v48, %v402_v47 }
 0x332   :  { %v407_v51 = vmax.f32 %v406_v50, 0.0 }
 0x334   :  { %444 = vmatmul.f32.vlgmr.msra.gmra.mxu0 %v407_v51 }
 0x3b1   :  { %v445_v53 = vpop.f32.mrf.mxu0 }
 0x3b2   :  { %v446_v54 = vadd.f32 %v485_v52, %v445_v53 }
 0x3b4   :  { %494 = vtanh.f32 %v446_v54 }
 0x3ba   :  { %v495_v55 = vpop.eup %494 }
 0x3bb   :  { %449 = vst [vmem:[#allocation10] sm:$0xff] %v495_v55 }
 0x3bc   :  { %460 = dma.vmem_to_hbm [thread:$0]  %s456_s20, 128, %s458_s12, [#allocation4]  }
 0x3bd   :  { %622 = dma.done.wait [#allocation4], 128  }
 0x3be   :  { %623 = vsyncadd [#allocation4], 4294967168 }
 0x3bf   :  { %465 = vsyncpa [#allocation3], 1 }
 0x3c0   :  { %466 = vsyncpa [#allocation6], 1 }
 0x3c1   :  { %467 = vsyncpa [#allocation9], 1 }
 0x3c2   :  { %468 = vsyncpa [#allocation4], 1 }

</bundles_post_ra>
